<compile_context>
chip_gen: v5e
topology: v5e:2x2
jax: 0.10.0
libtpu: 0.0.40
codegen_flags: <defaults>
</compile_context>

<pallas_src>
import functools

import jax
import jax.numpy as jnp
from jax.experimental import pallas as pl
from jax.experimental.pallas import tpu as pltpu

CHN_MID = 32             # hidden width of Dist2LogitLayer
CHN_IN_PAD = 8           # 5 real feature channels zero-padded to 8 sublanes
EPS = 0.1
LEAK = 0.2
NUM_CORES = 2            # per-core partial sums; harmless serial loop on 1-TC chips
DEFAULT_TILE_PX = 16384  # pixels (lanes) per grid step (32768 is fine on v6e/v7x)


def _cdiv(a, b):
    return -(-a // b)


def _round_up(a, b):
    return _cdiv(a, b) * b


def bce_ranking_kernel(d0_ref, d1_ref, j_ref, w1_ref, w2_ref, b2_ref, w3_ref,
                       b3_ref, o_ref, acc_ref, *, tiles_per_core, tile_px,
                       m_total):
    """One (1, TP) pixel tile -> BCE contributions accumulated into acc_ref.

    d0_ref/d1_ref/j_ref : (1, TP) f32  pixels on the lane axis
    w1_ref : (32, 8)  bf16  cols = {d0, d1, d0/(d1+e), d1/(d0+e), b1(ones), 0,0,0}
    w2_ref : (32, 32) bf16
    b2_ref : (32, 1)  f32
    w3_ref : (32, 1)  f32   layer-3 weight column (used on the VPU/XLU, not MXU)
    b3_ref : (1, 1)   f32
    o_ref  : (1, 8, 128) f32 per-core partial mean (written once, on the last step)
    acc_ref: (1, TP)  f32 VMEM scratch, lane-wise running sum of BCE
    """
    core = pl.program_id(0)
    step = pl.program_id(1)

    @pl.when(step == 0)
    def _init():
        acc_ref[...] = jnp.zeros_like(acc_ref)

    d0 = d0_ref[...]                                   # (1, TP) f32
    d1 = d1_ref[...]
    judge = j_ref[...]

    # ---- feature rows {d0, d1, d0/(d1+e), d1/(d0+e), 1} + 3 zero rows (K=8) ---
    inv_d1 = pl.reciprocal(d1 + EPS)                   # exact reciprocal (EUP)
    inv_d0 = pl.reciprocal(d0 + EPS)
    feats = jnp.concatenate(
        [d0, d1, d0 * inv_d1, d1 * inv_d0,
         jnp.ones((1, tile_px), jnp.float32),
         jnp.zeros((3, tile_px), jnp.float32)],
        axis=0).astype(jnp.bfloat16)                   # (8, TP) bf16

    # ---- layer 1 (bias folded into the 'ones' column): bf16 MXU, f32 acc ------
    h = jnp.dot(w1_ref[...], feats, preferred_element_type=jnp.float32)  # (32,TP)
    h = jnp.maximum(h, LEAK * h)

    # ---- layer 2: bf16 MXU, f32 acc -------------------------------------------
    h = jnp.dot(w2_ref[...], h.astype(jnp.bfloat16),
                preferred_element_type=jnp.float32)                      # (32,TP)
    h = h + b2_ref[...]
    h = jnp.maximum(h, LEAK * h)

    # ---- layer 3 (32 -> 1): VPU multiply + sublane reduce, off the MXU --------
    pre = jnp.sum(w3_ref[...] * h, axis=0, keepdims=True) + b3_ref[...]  # (1,TP)

    # ---- BCE from logits: softplus(pre) - per*pre ------------------------------
    # == -(per*log(sigmoid(pre)) + (1-per)*log(1-sigmoid(pre)))
    per = (judge + 1.0) * 0.5
    softplus = jnp.maximum(pre, 0.0) + jnp.log(1.0 + jnp.exp(-jnp.abs(pre)))
    bce = softplus - per * pre                                           # (1,TP)

    # ---- accumulate lane-wise; mask only on tiles containing padding ----------
    start = (core * tiles_per_core + step) * tile_px

    @pl.when(start + tile_px <= m_total)
    def _acc_full():
        acc_ref[...] += bce

    @pl.when(start + tile_px > m_total)
    def _acc_tail():
        lane = jax.lax.broadcasted_iota(jnp.int32, (1, tile_px), 1)
        acc_ref[...] += jnp.where(start + lane < m_total, bce, 0.0)

    # ---- single cross-lane reduce + scale + lane-dense write at the end -------
    @pl.when(step == tiles_per_core - 1)
    def _finalize():
        total = jnp.sum(acc_ref[...], axis=1, keepdims=True) * (1.0 / m_total)
        o_ref[...] = jnp.zeros_like(o_ref) + total     # (1,1) broadcast to (1,8,128)


def bce_ranking_loss(d0_nchw, d1_nchw, judge_nchw, kernel_params,
                     *, tile_px=DEFAULT_TILE_PX):
    """d0, d1, judge: equally-shaped arrays (e.g. (N,1,H,W)). Returns scalar loss."""
    assert d0_nchw.shape == d1_nchw.shape == judge_nchw.shape
    m = int(d0_nchw.size)
    w1, w2, b2, w3, b3 = kernel_params

    # Lane-dense tiling: TP pixels (multiple of 128) per grid step, tiles split
    # across NUM_CORES; the ragged tail is handled entirely inside the kernel.
    tp = min(tile_px, max(128, _round_up(_cdiv(m, NUM_CORES), 128)))
    tiles = _cdiv(m, tp)
    tiles_per_core = _cdiv(tiles, NUM_CORES)
    last_tile = tiles - 1

    # Reshape only — no stack / pad HBM round trip in the wrapper.
    d0p = d0_nchw.reshape(1, m).astype(jnp.float32)
    d1p = d1_nchw.reshape(1, m).astype(jnp.float32)
    jp = judge_nchw.reshape(1, m).astype(jnp.float32)

    kernel = functools.partial(bce_ranking_kernel,
                               tiles_per_core=tiles_per_core,
                               tile_px=tp, m_total=m)

    # Clamp out-of-range tile indices to the last real tile; those duplicated
    # tiles (and the boundary block's overhang lanes) are masked to zero inside
    # the kernel, so they contribute nothing.
    def px_map(cc, ii):
        return (0, jnp.minimum(cc * tiles_per_core + ii, last_tile))

    const = lambda cc, ii: (0, 0)   # grid-invariant: weights stay resident

    # TODO(synk): on v7x, switch the first grid axis to pltpu.CORE_PARALLEL if
    # plain "parallel" does not actually shard the grid across the two TCs.
    out = pl.pallas_call(
        kernel,
        out_shape=jax.ShapeDtypeStruct((NUM_CORES, 8, 128), jnp.float32),
        grid_spec=pltpu.PrefetchScalarGridSpec(
            num_scalar_prefetch=0,
            grid=(NUM_CORES, tiles_per_core),
            in_specs=[
                pl.BlockSpec((1, tp), px_map),              # d0
                pl.BlockSpec((1, tp), px_map),              # d1
                pl.BlockSpec((1, tp), px_map),              # judge
                pl.BlockSpec((CHN_MID, CHN_IN_PAD), const),  # W1 (bf16, bias folded)
                pl.BlockSpec((CHN_MID, CHN_MID), const),     # W2 (bf16)
                pl.BlockSpec((CHN_MID, 1), const),           # b2
                pl.BlockSpec((CHN_MID, 1), const),           # w3 column
                pl.BlockSpec((1, 1), const),                 # b3
            ],
            out_specs=pl.BlockSpec((1, 8, 128), lambda cc, ii: (cc, 0, 0)),
            scratch_shapes=[pltpu.VMEM((1, tp), jnp.float32)],
        ),
        compiler_params=pltpu.CompilerParams(
            dimension_semantics=("parallel", "arbitrary"),
            vmem_limit_bytes=32 * 1024 * 1024),
    )(d0p, d1p, jp, w1, w2, b2, w3, b3)

    # One partial mean per core; combine.
    return jnp.sum(out[:, 0, 0])


def init_raw_params(key, chn_mid=CHN_MID):
    """Synthetic Dist2LogitLayer weights in PyTorch-like layout.

    Mapping from a real checkpoint:
      w1 = model[0].weight[:, :, 0, 0] (32,5); b1 = model[0].bias (32,)
      w2 = model[2].weight[:, :, 0, 0] (32,32); b2 = model[2].bias (32,)
      w3 = model[4].weight[:, :, 0, 0] (1,32);  b3 = model[4].bias (1,)
    """
    k1, k2, k3, k4, k5, k6 = jax.random.split(key, 6)
    w1 = 0.2 * jax.random.normal(k1, (chn_mid, 5), jnp.float32)
    b1 = 0.1 * jax.random.normal(k2, (chn_mid,), jnp.float32)
    w2 = 0.1 * jax.random.normal(k3, (chn_mid, chn_mid), jnp.float32)
    b2 = 0.1 * jax.random.normal(k4, (chn_mid,), jnp.float32)
    w3 = 0.2 * jax.random.normal(k5, (1, chn_mid), jnp.float32)
    b3 = 0.1 * jax.random.normal(k6, (), jnp.float32)
    return (w1, b1, w2, b2, w3, b3)


def pack_params(raw):
    """Pack raw (PyTorch-layout) params into the kernel's layout.

    Kernel feature rows are {d0, d1, d0/(d1+eps), d1/(d0+eps), 1, 0, 0, 0}, so
    the d0-d1 channel and b1 are folded into W1; W1/W2 are bf16 MXU operands.
    """
    w1, b1, w2, b2, w3, b3 = raw
    chn = w1.shape[0]
    zeros = jnp.zeros((chn,), jnp.float32)
    w1_eff = jnp.stack(
        [w1[:, 0] + w1[:, 2],     # d0 column (absorbs +1 * (d0-d1) weight)
         w1[:, 1] - w1[:, 2],     # d1 column (absorbs -1 * (d0-d1) weight)
         w1[:, 3],                # d0/(d1+eps)
         w1[:, 4],                # d1/(d0+eps)
         b1,                      # 'ones' row -> bias
         zeros, zeros, zeros],    # K padded 5 -> 8
        axis=1)                   # (32, 8)
    return (w1_eff.astype(jnp.bfloat16),
            w2.astype(jnp.bfloat16),
            b2.reshape(chn, 1).astype(jnp.float32),
            w3[0, :].reshape(chn, 1).astype(jnp.float32),
            jnp.asarray(b3, jnp.float32).reshape(1, 1))


def _reference(d0, d1, judge, raw):
    """Pure-JAX f32 replica of the PyTorch module (sigmoid + BCELoss, -100 log clamp)."""
    w1, b1, w2, b2, w3, b3 = raw
    m = d0.size
    d0f = d0.reshape(m, 1).astype(jnp.float32)
    d1f = d1.reshape(m, 1).astype(jnp.float32)
    jf = judge.reshape(m, 1).astype(jnp.float32)
    feats = jnp.concatenate(
        [d0f, d1f, d0f - d1f, d0f / (d1f + EPS), d1f / (d0f + EPS)], axis=1)
    z = feats @ w1.T + b1
    h = jnp.where(z > 0, z, LEAK * z)
    z = h @ w2.T + b2
    h = jnp.where(z > 0, z, LEAK * z)
    pre = h @ w3.T + b3
    logit = jax.nn.sigmoid(pre)
    per = (jf + 1.0) * 0.5
    bce = -(per * jnp.maximum(jnp.log(logit), -100.0)
            + (1.0 - per) * jnp.maximum(jnp.log(1.0 - logit), -100.0))
    return jnp.mean(bce)


if __name__ == "__main__":
    key = jax.random.PRNGKey(0)
    kp, k0, k1, k2, k3, k4, k5 = jax.random.split(key, 7)
    raw = init_raw_params(kp)
    params = pack_params(raw)

    # bf16 MXU operands (per perf review) -> tolerance vs. the f32 PyTorch-faithful
    # reference is deliberately relaxed; f32 accumulation keeps the drift small.
    RTOL, ATOL = 5e-2, 5e-3

    # Case 1: batch=2, 1x16x16 (M = 512; exact tile fit, exercises 2-core split).
    shape = (2, 1, 16, 16)
    d0 = jax.random.uniform(k0, shape, jnp.float32, 0.0, 1.0)
    d1 = jax.random.uniform(k1, shape, jnp.float32, 0.0, 1.0)
    judge = jax.random.uniform(k2, shape, jnp.float32, -1.0, 1.0)
    loss = jax.block_until_ready(bce_ranking_loss(d0, d1, judge, params))
    ref = _reference(d0, d1, judge, raw)
    assert jnp.isfinite(loss), "loss is not finite"
    assert jnp.allclose(loss, ref, rtol=RTOL, atol=ATOL), (loss, ref)

    # Case 2: odd sizes (M = 741) exercise the boundary block + in-kernel masking.
    shape2 = (3, 1, 19, 13)
    d0b = jax.random.uniform(k3, shape2, jnp.float32, 0.0, 1.0)
    d1b = jax.random.uniform(k4, shape2, jnp.float32, 0.0, 1.0)
    jb = jax.random.uniform(k5, shape2, jnp.float32, -1.0, 1.0)
    loss2 = jax.block_until_ready(bce_ranking_loss(d0b, d1b, jb, params))
    ref2 = _reference(d0b, d1b, jb, raw)
    assert jnp.isfinite(loss2), "loss2 is not finite"
    assert jnp.allclose(loss2, ref2, rtol=RTOL, atol=ATOL), (loss2, ref2)

    print("KERNEL_OK")
</pallas_src>

<mosaic_0001>
module attributes {stable_mosaic.version = 11 : i64} {
  func.func @bce_ranking_kernel(%arg0: i32, %arg1: i32, %arg2: memref<1x256xf32, #tpu.memory_space<vmem>>, %arg3: memref<1x256xf32, #tpu.memory_space<vmem>>, %arg4: memref<1x256xf32, #tpu.memory_space<vmem>>, %arg5: memref<32x8xbf16, #tpu.memory_space<vmem>>, %arg6: memref<32x32xbf16, #tpu.memory_space<vmem>>, %arg7: memref<32x1xf32, #tpu.memory_space<vmem>>, %arg8: memref<32x1xf32, #tpu.memory_space<vmem>>, %arg9: memref<1x1xf32, #tpu.memory_space<vmem>>, %arg10: memref<1x8x128xf32, #tpu.memory_space<vmem>>, %arg11: memref<1x256xf32, #tpu.memory_space<vmem>>) attributes {dimension_semantics = [#tpu.dimension_semantics<parallel>, #tpu.dimension_semantics<arbitrary>], iteration_bounds = array<i64: 2, 1>, scalar_prefetch = 0 : i64, scratch_operands = 1 : i64, tpu.core_type = #tpu.core_type<tc>, window_params = [{transform_indices = @transform_0, window_bounds = array<i64: 1, 256>}, {transform_indices = @transform_1, window_bounds = array<i64: 1, 256>}, {transform_indices = @transform_2, window_bounds = array<i64: 1, 256>}, {pipeline_mode = #tpu.pipeline_mode<synchronous>, transform_indices = @transform_3, window_bounds = array<i64: 32, 8>}, {pipeline_mode = #tpu.pipeline_mode<synchronous>, transform_indices = @transform_4, window_bounds = array<i64: 32, 32>}, {pipeline_mode = #tpu.pipeline_mode<synchronous>, transform_indices = @transform_5, window_bounds = array<i64: 32, 1>}, {pipeline_mode = #tpu.pipeline_mode<synchronous>, transform_indices = @transform_6, window_bounds = array<i64: 32, 1>}, {pipeline_mode = #tpu.pipeline_mode<synchronous>, transform_indices = @transform_7, window_bounds = array<i64: 1, 1>}, {transform_indices = @transform_8, window_bounds = array<i64: 1, 8, 128>}]} {
    %c0_i32 = arith.constant 0 : i32
    %0 = arith.cmpi eq, %arg1, %c0_i32 : i32
    %1 = arith.extui %0 : i1 to i32
    %c0_i32_0 = arith.constant 0 : i32
    %2 = arith.cmpi ne, %1, %c0_i32_0 : i32
    scf.if %2 {
      %cst_36 = arith.constant 0.000000e+00 : f32
      %70 = vector.broadcast %cst_36 : f32 to vector<1x256xf32>
      %c0_37 = arith.constant 0 : index
      %c0_38 = arith.constant 0 : index
      %71 = vector.load %arg11[%c0_37, %c0_38] : memref<1x256xf32, #tpu.memory_space<vmem>>, vector<1x256xf32>
      tpu.vector_store %arg11[%c0_37, %c0_38], %70 {strides = array<i32>} : memref<1x256xf32, #tpu.memory_space<vmem>>, vector<1x256xf32>,
    } else {
    }
    %c0 = arith.constant 0 : index
    %c0_1 = arith.constant 0 : index
    %3 = vector.load %arg2[%c0, %c0_1] : memref<1x256xf32, #tpu.memory_space<vmem>>, vector<1x256xf32>
    %c0_2 = arith.constant 0 : index
    %c0_3 = arith.constant 0 : index
    %4 = vector.load %arg3[%c0_2, %c0_3] : memref<1x256xf32, #tpu.memory_space<vmem>>, vector<1x256xf32>
    %c0_4 = arith.constant 0 : index
    %c0_5 = arith.constant 0 : index
    %5 = vector.load %arg4[%c0_4, %c0_5] : memref<1x256xf32, #tpu.memory_space<vmem>>, vector<1x256xf32>
    %cst = arith.constant 1.000000e-01 : f32
    %6 = vector.broadcast %cst : f32 to vector<1x256xf32>
    %7 = arith.addf %4, %6 : vector<1x256xf32>
    %8 = tpu.reciprocal %7 : vector<1x256xf32> -> vector<1x256xf32>
    %cst_6 = arith.constant 1.000000e-01 : f32
    %9 = vector.broadcast %cst_6 : f32 to vector<1x256xf32>
    %10 = arith.addf %3, %9 : vector<1x256xf32>
    %11 = tpu.reciprocal %10 : vector<1x256xf32> -> vector<1x256xf32>
    %12 = arith.mulf %3, %8 : vector<1x256xf32>
    %13 = arith.mulf %4, %11 : vector<1x256xf32>
    %cst_7 = arith.constant 1.000000e+00 : f32
    %14 = vector.broadcast %cst_7 : f32 to vector<1x256xf32>
    %cst_8 = arith.constant 0.000000e+00 : f32
    %15 = vector.broadcast %cst_8 : f32 to vector<3x256xf32>
    %16 = tpu.concatenate %3, %4, %12, %13, %14, %15 in 0 : vector<1x256xf32>, vector<1x256xf32>, vector<1x256xf32>, vector<1x256xf32>, vector<1x256xf32>, vector<3x256xf32> -> vector<8x256xf32>
    %17 = arith.truncf %16 : vector<8x256xf32> to vector<8x256xbf16>
    %c0_9 = arith.constant 0 : index
    %c0_10 = arith.constant 0 : index
    %18 = vector.load %arg5[%c0_9, %c0_10] : memref<32x8xbf16, #tpu.memory_space<vmem>>, vector<32x8xbf16>
    %cst_11 = arith.constant dense<0.000000e+00> : vector<32x256xf32>
    %19 = tpu.matmul %18, %17, %cst_11 {dimension_numbers = #tpu.dot_dimension_numbers<[1], [0], [0], [1], [0, 0, 1, 1], [], []>} : vector<32x8xbf16>, vector<8x256xbf16>, vector<32x256xf32> -> vector<32x256xf32>
    %cst_12 = arith.constant 2.000000e-01 : f32
    %20 = vector.broadcast %cst_12 : f32 to vector<32x256xf32>
    %21 = arith.mulf %20, %19 : vector<32x256xf32>
    %22 = arith.maximumf %19, %21 : vector<32x256xf32>
    %c0_13 = arith.constant 0 : index
    %c0_14 = arith.constant 0 : index
    %23 = vector.load %arg6[%c0_13, %c0_14] : memref<32x32xbf16, #tpu.memory_space<vmem>>, vector<32x32xbf16>
    %24 = arith.truncf %22 : vector<32x256xf32> to vector<32x256xbf16>
    %cst_15 = arith.constant dense<0.000000e+00> : vector<32x256xf32>
    %25 = tpu.matmul %23, %24, %cst_15 {dimension_numbers = #tpu.dot_dimension_numbers<[1], [0], [0], [1], [0, 0, 1, 1], [], []>} : vector<32x32xbf16>, vector<32x256xbf16>, vector<32x256xf32> -> vector<32x256xf32>
    %c0_16 = arith.constant 0 : index
    %c0_17 = arith.constant 0 : index
    %26 = vector.load %arg7[%c0_16, %c0_17] : memref<32x1xf32, #tpu.memory_space<vmem>>, vector<32x1xf32>
    %27 = vector.broadcast %26 : vector<32x1xf32> to vector<32x256xf32>
    %28 = arith.addf %25, %27 : vector<32x256xf32>
    %cst_18 = arith.constant 2.000000e-01 : f32
    %29 = vector.broadcast %cst_18 : f32 to vector<32x256xf32>
    %30 = arith.mulf %29, %28 : vector<32x256xf32>
    %31 = arith.maximumf %28, %30 : vector<32x256xf32>
    %c0_19 = arith.constant 0 : index
    %c0_20 = arith.constant 0 : index
    %32 = vector.load %arg8[%c0_19, %c0_20] : memref<32x1xf32, #tpu.memory_space<vmem>>, vector<32x1xf32>
    %33 = vector.broadcast %32 : vector<32x1xf32> to vector<32x256xf32>
    %34 = arith.mulf %33, %31 : vector<32x256xf32>
    %cst_21 = arith.constant dense<0.000000e+00> : vector<256xf32>
    %35 = vector.multi_reduction <add>, %34, %cst_21 [0] : vector<32x256xf32> to vector<256xf32>
    %36 = vector.shape_cast %35 : vector<256xf32> to vector<1x256xf32>
    %c0_22 = arith.constant 0 : index
    %c0_23 = arith.constant 0 : index
    %37 = vector.load %arg9[%c0_22, %c0_23] : memref<1x1xf32, #tpu.memory_space<vmem>>, vector<1x1xf32>
    %38 = vector.broadcast %37 : vector<1x1xf32> to vector<1x256xf32>
    %39 = arith.addf %36, %38 : vector<1x256xf32>
    %cst_24 = arith.constant 1.000000e+00 : f32
    %40 = vector.broadcast %cst_24 : f32 to vector<1x256xf32>
    %41 = arith.addf %5, %40 : vector<1x256xf32>
    %cst_25 = arith.constant 5.000000e-01 : f32
    %42 = vector.broadcast %cst_25 : f32 to vector<1x256xf32>
    %43 = arith.mulf %41, %42 : vector<1x256xf32>
    %cst_26 = arith.constant 0.000000e+00 : f32
    %44 = vector.broadcast %cst_26 : f32 to vector<1x256xf32>
    %45 = arith.maximumf %39, %44 : vector<1x256xf32>
    %46 = math.absf %39 : vector<1x256xf32>
    %cst_27 = arith.constant 0.000000e+00 : f32
    %47 = vector.broadcast %cst_27 : f32 to vector<1x256xf32>
    %48 = arith.subf %47, %46 : vector<1x256xf32>
    %49 = math.exp %48 : vector<1x256xf32>
    %cst_28 = arith.constant 1.000000e+00 : f32
    %50 = vector.broadcast %cst_28 : f32 to vector<1x256xf32>
    %51 = arith.addf %50, %49 : vector<1x256xf32>
    %52 = math.log %51 : vector<1x256xf32>
    %53 = arith.addf %45, %52 : vector<1x256xf32>
    %54 = arith.mulf %43, %39 : vector<1x256xf32>
    %55 = arith.subf %53, %54 : vector<1x256xf32>
    %c1_i32 = arith.constant 1 : i32
    %56 = arith.muli %arg0, %c1_i32 : i32
    %57 = arith.addi %56, %arg1 : i32
    %c256_i32 = arith.constant 256 : i32
    %58 = arith.muli %57, %c256_i32 : i32
    %c256_i32_29 = arith.constant 256 : i32
    %59 = arith.addi %58, %c256_i32_29 : i32
    %c512_i32 = arith.constant 512 : i32
    %60 = arith.cmpi sle, %59, %c512_i32 : i32
    %61 = arith.extui %60 : i1 to i32
    %c0_i32_30 = arith.constant 0 : i32
    %62 = arith.cmpi ne, %61, %c0_i32_30 : i32
    scf.if %62 {
      %c0_36 = arith.constant 0 : index
      %c0_37 = arith.constant 0 : index
      %70 = vector.load %arg11[%c0_36, %c0_37] : memref<1x256xf32, #tpu.memory_space<vmem>>, vector<1x256xf32>
      %71 = arith.addf %70, %55 : vector<1x256xf32>
      %c0_38 = arith.constant 0 : index
      %c0_39 = arith.constant 0 : index
      %72 = vector.load %arg11[%c0_38, %c0_39] : memref<1x256xf32, #tpu.memory_space<vmem>>, vector<1x256xf32>
      tpu.vector_store %arg11[%c0_38, %c0_39], %71 {strides = array<i32>} : memref<1x256xf32, #tpu.memory_space<vmem>>, vector<1x256xf32>,
    } else {
    }
    %c256_i32_31 = arith.constant 256 : i32
    %63 = arith.addi %58, %c256_i32_31 : i32
    %c512_i32_32 = arith.constant 512 : i32
    %64 = arith.cmpi sgt, %63, %c512_i32_32 : i32
    %65 = arith.extui %64 : i1 to i32
    %c0_i32_33 = arith.constant 0 : i32
    %66 = arith.cmpi ne, %65, %c0_i32_33 : i32
    scf.if %66 {
      %70 = tpu.iota {dimensions = array<i32: 1>} : vector<1x256xi32>
      %c0_36 = arith.constant 0 : index
      %c0_37 = arith.constant 0 : index
      %71 = vector.load %arg11[%c0_36, %c0_37] : memref<1x256xf32, #tpu.memory_space<vmem>>, vector<1x256xf32>
      %72 = vector.broadcast %58 : i32 to vector<1x256xi32>
      %73 = arith.addi %72, %70 : vector<1x256xi32>
      %c512_i32_38 = arith.constant 512 : i32
      %74 = vector.broadcast %c512_i32_38 : i32 to vector<1x256xi32>
      %75 = arith.cmpi slt, %73, %74 : vector<1x256xi32>
      %cst_39 = arith.constant 0.000000e+00 : f32
      %76 = vector.broadcast %cst_39 : f32 to vector<1x256xf32>
      %77 = arith.select %75, %55, %76 : vector<1x256xi1>, vector<1x256xf32>
      %78 = arith.addf %71, %77 : vector<1x256xf32>
      %c0_40 = arith.constant 0 : index
      %c0_41 = arith.constant 0 : index
      %79 = vector.load %arg11[%c0_40, %c0_41] : memref<1x256xf32, #tpu.memory_space<vmem>>, vector<1x256xf32>
      tpu.vector_store %arg11[%c0_40, %c0_41], %78 {strides = array<i32>} : memref<1x256xf32, #tpu.memory_space<vmem>>, vector<1x256xf32>,
    } else {
    }
    %c0_i32_34 = arith.constant 0 : i32
    %67 = arith.cmpi eq, %arg1, %c0_i32_34 : i32
    %68 = arith.extui %67 : i1 to i32
    %c0_i32_35 = arith.constant 0 : i32
    %69 = arith.cmpi ne, %68, %c0_i32_35 : i32
    scf.if %69 {
      %c0_36 = arith.constant 0 : index
      %c0_37 = arith.constant 0 : index
      %70 = vector.load %arg11[%c0_36, %c0_37] : memref<1x256xf32, #tpu.memory_space<vmem>>, vector<1x256xf32>
      %cst_38 = arith.constant dense<0.000000e+00> : vector<1xf32>
      %71 = vector.multi_reduction <add>, %70, %cst_38 [1] : vector<1x256xf32> to vector<1xf32>
      %72 = vector.shape_cast %71 : vector<1xf32> to vector<1x1xf32>
      %cst_39 = arith.constant 0.001953125 : f32
      %73 = vector.broadcast %cst_39 : f32 to vector<1x1xf32>
      %74 = arith.mulf %72, %73 : vector<1x1xf32>
      %cst_40 = arith.constant 0.000000e+00 : f32
      %75 = vector.broadcast %cst_40 : f32 to vector<1x8x128xf32>
      %76 = vector.shape_cast %74 : vector<1x1xf32> to vector<1x1x1xf32>
      %77 = vector.broadcast %76 : vector<1x1x1xf32> to vector<1x8x128xf32>
      %78 = arith.addf %75, %77 : vector<1x8x128xf32>
      %c0_41 = arith.constant 0 : index
      %c0_42 = arith.constant 0 : index
      %c0_43 = arith.constant 0 : index
      %79 = vector.load %arg10[%c0_41, %c0_42, %c0_43] : memref<1x8x128xf32, #tpu.memory_space<vmem>>, vector<1x8x128xf32>
      tpu.vector_store %arg10[%c0_41, %c0_42, %c0_43], %78 {strides = array<i32>} : memref<1x8x128xf32, #tpu.memory_space<vmem>>, vector<1x8x128xf32>,
    } else {
    }
    return
  }
  func.func @transform_0(%arg0: i32, %arg1: i32) -> (i32, i32) {
    %c1_i32 = arith.constant 1 : i32
    %0 = arith.muli %arg0, %c1_i32 : i32
    %1 = arith.addi %0, %arg1 : i32
    %c1_i32_0 = arith.constant 1 : i32
    %2 = arith.minsi %1, %c1_i32_0 : i32
    %c0_i32 = arith.constant 0 : i32
    %c0_i32_1 = arith.constant 0 : i32
    return %c0_i32, %2 : i32, i32
  }
  func.func @transform_1(%arg0: i32, %arg1: i32) -> (i32, i32) {
    %c1_i32 = arith.constant 1 : i32
    %0 = arith.muli %arg0, %c1_i32 : i32
    %1 = arith.addi %0, %arg1 : i32
    %c1_i32_0 = arith.constant 1 : i32
    %2 = arith.minsi %1, %c1_i32_0 : i32
    %c0_i32 = arith.constant 0 : i32
    %c0_i32_1 = arith.constant 0 : i32
    return %c0_i32, %2 : i32, i32
  }
  func.func @transform_2(%arg0: i32, %arg1: i32) -> (i32, i32) {
    %c1_i32 = arith.constant 1 : i32
    %0 = arith.muli %arg0, %c1_i32 : i32
    %1 = arith.addi %0, %arg1 : i32
    %c1_i32_0 = arith.constant 1 : i32
    %2 = arith.minsi %1, %c1_i32_0 : i32
    %c0_i32 = arith.constant 0 : i32
    %c0_i32_1 = arith.constant 0 : i32
    return %c0_i32, %2 : i32, i32
  }
  func.func @transform_3(%arg0: i32, %arg1: i32) -> (i32, i32) {
    %c0_i32 = arith.constant 0 : i32
    %c0_i32_0 = arith.constant 0 : i32
    %c0_i32_1 = arith.constant 0 : i32
    return %c0_i32, %c0_i32_0 : i32, i32
  }
  func.func @transform_4(%arg0: i32, %arg1: i32) -> (i32, i32) {
    %c0_i32 = arith.constant 0 : i32
    %c0_i32_0 = arith.constant 0 : i32
    %c0_i32_1 = arith.constant 0 : i32
    return %c0_i32, %c0_i32_0 : i32, i32
  }
  func.func @transform_5(%arg0: i32, %arg1: i32) -> (i32, i32) {
    %c0_i32 = arith.constant 0 : i32
    %c0_i32_0 = arith.constant 0 : i32
    %c0_i32_1 = arith.constant 0 : i32
    return %c0_i32, %c0_i32_0 : i32, i32
  }
  func.func @transform_6(%arg0: i32, %arg1: i32) -> (i32, i32) {
    %c0_i32 = arith.constant 0 : i32
    %c0_i32_0 = arith.constant 0 : i32
    %c0_i32_1 = arith.constant 0 : i32
    return %c0_i32, %c0_i32_0 : i32, i32
  }
  func.func @transform_7(%arg0: i32, %arg1: i32) -> (i32, i32) {
    %c0_i32 = arith.constant 0 : i32
    %c0_i32_0 = arith.constant 0 : i32
    %c0_i32_1 = arith.constant 0 : i32
    return %c0_i32, %c0_i32_0 : i32, i32
  }
  func.func @transform_8(%arg0: i32, %arg1: i32) -> (i32, i32, i32) {
    %c0_i32 = arith.constant 0 : i32
    %c0_i32_0 = arith.constant 0 : i32
    %c0_i32_1 = arith.constant 0 : i32
    return %arg0, %c0_i32, %c0_i32_0 : i32, i32, i32
  }
}

</mosaic_0001>

<bundles_post_ra>
// kernel: tpu_custom_call.1
= control target key start
LH: loop header
LB: loop body
LE: loop exit
PB: predicated region body
PF: predicated region fallthrough
CT: control target
= control target key end

     0   :  { %s1372_s0 = inlined_call_operand.vmem [shape: f32[1,512], index: 0, kind: input, shape index: {}]   ;;  %s1373_s1 = inlined_call_operand.vmem [shape: f32[1,512], index: 1, kind: input, shape index: {}]   ;;  %s1374_s2 = inlined_call_operand.vmem [shape: f32[1,512], index: 2, kind: input, shape index: {}]   ;;  %s1375_s3 = inlined_call_operand.vmem [shape: bf16[32,8], index: 3, kind: input, shape index: {}]   ;;  %s1376_s4 = inlined_call_operand.vmem [shape: bf16[32,32], index: 4, kind: input, shape index: {}]   ;;  %s1377_s5 = inlined_call_operand.vmem [shape: f32[32,1], index: 5, kind: input, shape index: {}]   ;;  %s1378_s6 = inlined_call_operand.vmem [shape: f32[32,1], index: 6, kind: input, shape index: {}]   ;;  %s1379_s7 = inlined_call_operand.<no memory space> [shape: f32[1,1], index: 7, kind: input, shape index: {}]   ;;  %s1380_s8 = inlined_call_operand.hbm [shape: f32[2,8,128], index: 8, kind: output, shape index: {}]  }
   0x1   :  { %v13_v0 = vstv %s1379_s7 }
   0x2   :  { %14 = vst [vmem:[#allocation3] sm:$0x1] %v13_v0 }
   0x3   :  { %15 = vsyncpa [#allocation5], 0 }
   0x4   :  { %17 = vsyncpa [#allocation5 + $0x1], 0  ;;  %s1183_s29 = smov 0   ;;  %s1185_s30 = smov 0  }
   0x5   :  { %s1187_s9 = smov 0   ;;  %s1189_s10 = smov 0  }
   0x6   :  { %s1191_s11 = smov 0   ;;  %s1193_s12 = smov 0  }
   0x7 LB: > { %s937_s7 = sadd.s32 4294967295, %s1131_s12   ;;  %s938_s13 = sadd.s32 4294967294, %s1131_s12   ;;  %s1131_s12 = sphi %s1193_s12, %s23_s12   ;;  %s1127_s11 = sphi %s1191_s11, %s1391_s11   ;;  %s1123_s10 = sphi %s1189_s10, %s1390_s10   ;;  %s1119_s9 = sphi %s1187_s9, %s1389_s9   ;;  %s1115_s30 = sphi %s1185_s30, %s1388_s30   ;;  %s1111_s29 = sphi %s1183_s29, %s1387_s29  }
   0x8   : > { %s35_s14 = sadd.s32 1, %s1127_s11  ;;  %s243_s15 = sadd.s32 1, %s1119_s9 }
   0x9   : > { %p37_p0 = scmp.ge.s32.totalorder %s35_s14, 2  ;;  %p253_p1 = scmp.ne.s32.totalorder %s1119_s9, %s1115_s30 }
   0xa   : > { %p254_p2 = scmp.eq.s32.totalorder %s937_s7, 1  ;;  %p259_p3 = scmp.ne.s32.totalorder %s1115_s30, %s1111_s29 }
   0xb   : > { %s1393_s14 = smov (%p37_p0, %s35_s14), 0  ;;  %p260_p5 = scmp.eq.s32.totalorder %s938_s13, 1 }
   0xc   : > { %p1223_p4 = por %p254_p2, %p253_p1  ;;  %s240_s17 = ssub.s32 %s1127_s11, %s1393_s14 }
   0xd   : > { %p941_p6 = scmp.ge.s32.totalorder %s1131_s12, 1  ;;  %p241_p7 = scmp.eq.s32.totalorder %s240_s17, 0 }
   0xe   : > { %p1230_p8 = por %p260_p5, %p259_p3  ;;  %p335_p9 = scmp.lt.s32.totalorder %s1131_s12, 3 }
   0xf   : > { %s1236_s19 = scalar_select %p241_p7, %s1119_s9, %s243_s15  }
  0x10   : > { %p336_p10 = pnand %p941_p6, %p335_p9 }
  0x11   : > { %s382_s20 = sand.u32 (!%p336_p10), 1, %s1115_s30   ;;  %p386_p11 = scmp.lt.s32.totalorder (!%p336_p10), %s1123_s10, 1 }
  0x12   : > { %339 = sbr.rel (%p336_p10) target bundleno = 599 (0x257), region = 52  ;;  %s1242_s21 = sshll.u32 (!%p336_p10), %s382_s20, 3 }
  0x13   : > { %s970_s24 = sshll.u32 (!%p336_p10), %s1123_s10, 8 }
  0x14   : > { %s1309_s25 = sadd.s32 (!%p336_p10), 256, %s970_s24 }
  0x15   : > { %p971_p13 = scmp.gt.s32.totalorder (!%p336_p10), %s1309_s25, 512 }
  0x17   : > { %v423_v1 = vlaneseq  ;;  %s387_s22 = scalar_select %p386_p11, %s1123_s10, 1  ;;  %v1133_v3 = vmov 0.0   ;;  %vm483_vm9 = vcmask 1040384   ;;  %vm486_vm10 = vcmask 1041408   ;;  %v977_v53 = vld [vmem:[%s1375_s3] sm:$0xff]  ;;  %v978_v54 = vld [vmem:[%s1375_s3 + $0x8] sm:$0xff] }
  0x18   : > { %vm489_vm11 = vcmask 1042432   ;;  %vm492_vm12 = vcmask 1043456   ;;  %vm495_vm13 = vcmask 1044480   ;;  %vm514_vm14 = vcmask 64512   ;;  %v589_v57 = vld [vmem:[%s1377_s5] sm:$0xff]  ;;  %v591_v58 = vld [vmem:[%s1377_s5 + $0x10] sm:$0xff] }
  0x19   : > { %vm1245_vm0 = vcmp.lt.s32.totalorder %v423_v1, 256  ;;  %s943_s23 = sshll.u32 %s387_s22, 1  ;;  %v1134_v59 = vmov 0   ;;  %v590_v0 = vld [vmem:[%s1377_s5 + $0x8] sm:$0xff]  ;;  %vm623_vm15 = vcmask 261120  }
  0x1a   : > { %427 = vst.msk [vmem:[#allocation2] sm:$0x3] %vm1245_vm0, %v1133_v3  ;;  %p389_p12 = scmp.lt.s32.totalorder %s943_s23, 3  ;;  %1038 = vset.pattern.permute.xlu0 %v1134_v59  ;;  %1039 = vset.pattern.permute.xlu1 %v1134_v59  ;;  %v592_v3 = vld [vmem:[%s1377_s5 + $0x18] sm:$0xff] }
  0x1b   : > { %595 = vperm.xlu0 %1038, %v589_v57   ;;  %605 = vperm.xlu1 %1039, %v591_v58  }
  0x1c   : > { %s1395_s23 = smov (!%p389_p12, %s943_s23), 3  ;;  %1040 = vset.pattern.permute.xlu2 %v1134_v59 }
  0x1d   : > { %s391_s26 = scalar_lea.vmem %s1372_s0, %s1395_s23  ;;  %s402_s7 = scalar_lea.vmem %s1373_s1, %s1395_s23 }
  0x1e   : > { %v428_v4 = vld [vmem:[%s391_s26] sm:$0x3]  ;;  %s413_s28 = scalar_lea.vmem %s1374_s2, %s1395_s23  ;;  %s384_s23 = scalar_lea.vmem [#allocation4], %s1242_s21 }
  0x1f   : > { %v429_v5 = vld [vmem:[%s402_s7] sm:$0x3]  ;;  %v446_v7 = vadd.f32 0.1, %v428_v4  ;;  %v464_v22 = vperm.slane %v428_v4, 0  ;;  %v465_v27 = vperm.slane %v428_v4, 1 }
  0x20   : > { %v431_v6 = vadd.f32 0.1, %v429_v5  ;;  %v469_v25 = vperm.slane %v429_v5, 0  ;;  %v470_v28 = vperm.slane %v429_v5, 1 }
  0x21   : > { %v458_v15 = vand.u32 2147483648, %v446_v7  ;;  %vm452_vm3 = vweird.f32 %v446_v7  ;;  %v456_v17 = vand.u32 2147483647, %v446_v7 }
  0x22   : > { %1041 = vrcp.f32 %v431_v6  ;;  %vm437_vm1 = vweird.f32 %v431_v6  ;;  %v443_v11 = vand.u32 2147483648, %v431_v6  ;;  %v441_v14 = vand.u32 2147483647, %v431_v6 }
  0x23   : > { %1043 = vrcp.f32 %v446_v7  ;;  %v459_v24 = vor.u32 1.1754944e-38, %v458_v15  ;;  %vm457_vm8 = vcmp.eq.f32.partialorder %v456_v17, 8.507059e+37  ;;  %v484_v35 = vsel %vm483_vm9, %v464_v22, %v469_v25  ;;  %600 = vperm.xlu0 %1038, %v590_v0   ;;  %610 = vperm.xlu1 %1039, %v592_v3   ;;  %v685_v25 = vld [vmem:[%s1378_s6 + $0x8] sm:$0xff] }
  0x24   : > { %v444_v20 = vor.u32 1.1754944e-38, %v443_v11  ;;  %vm442_vm6 = vcmp.eq.f32.partialorder %v441_v14, 8.507059e+37  ;;  %v485_v36 = vsel %vm483_vm9, %v465_v27, %v470_v28 }
  0x28   : > { %v1042_v8 = vpop.eup %1041 }
  0x29   : > { %v1044_v9 = vpop.eup %1043  ;;  %v433_v10 = vmul.f32 %v1042_v8, %v431_v6  ;;  %vm438_vm2 = vweird.f32 %v1042_v8  ;;  %v684_v6 = vld [vmem:[%s1378_s6] sm:$0xff] }
  0x2a   : > { %v448_v12 = vmul.f32 %v1044_v9, %v446_v7  ;;  %vm453_vm4 = vweird.f32 %v1044_v9  ;;  %vm1262_vm5 = vmor %vm437_vm1, %vm438_vm2  ;;  %690 = vperm.xlu2 %1040, %v684_v6  }
  0x2b   : > { %v434_v13 = vsub.f32 1.0, %v433_v10  ;;  %vm454_vm7 = vmor %vm452_vm3, %vm453_vm4 }
  0x2c   : > { %v449_v16 = vsub.f32 1.0, %v448_v12 }
  0x2d   : > { %v435_v18 = vmul.f32 %v1042_v8, %v434_v13 }
  0x2e   : > { %v450_v21 = vmul.f32 %v1044_v9, %v449_v16 }
  0x2f   : > { %v436_v23 = vadd.f32 %v1042_v8, %v435_v18 }
  0x30   : > { %v451_v26 = vadd.f32 %v1044_v9, %v450_v21 }
  0x31   : > { %v440_v29 = vsel %vm1262_vm5, %v1042_v8, %v436_v23  ;;  %v686_v23 = vld [vmem:[%s1378_s6 + $0x10] sm:$0xff] }
  0x32   : > { %v445_v30 = vsel %vm442_vm6, %v444_v20, %v440_v29  ;;  %v455_v31 = vsel %vm454_vm7, %v1044_v9, %v451_v26  ;;  %700 = vperm.xlu0 %1038, %v686_v23   ;;  %695 = vperm.xlu2 %1040, %v685_v25  }
  0x33   : > { %v460_v32 = vsel %vm457_vm8, %v459_v24, %v455_v31  ;;  %v461_v33 = vmul.f32 %v445_v30, %v428_v4  ;;  %v687_v24 = vld [vmem:[%s1378_s6 + $0x18] sm:$0xff]  ;;  %v979_v30 = vld [vmem:[%s1376_s4] sm:$0xff] }
  0x34   : > { %v462_v34 = vmul.f32 %v460_v32, %v429_v5  ;;  %705 = vperm.xlu1 %1039, %v687_v24   ;;  %v734_v31 = vld [vmem:[#allocation3] sm:$0x1]  ;;  %v980_v32 = vld [vmem:[%s1376_s4 + $0x8] sm:$0xff] }
  0x35   : > { %v474_v37 = vperm.slane %v461_v33, 0  ;;  %v475_v38 = vperm.slane %v461_v33, 1 }
  0x36   : > { %v479_v39 = vperm.slane %v462_v34, 0  ;;  %v480_v40 = vperm.slane %v462_v34, 1 }
  0x37   : > { %v487_v41 = vsel %vm486_vm10, %v484_v35, %v474_v37  ;;  %v488_v42 = vsel %vm486_vm10, %v485_v36, %v475_v38 }
  0x38   : > { %v490_v43 = vsel %vm489_vm11, %v487_v41, %v479_v39  ;;  %v491_v44 = vsel %vm489_vm11, %v488_v42, %v480_v40 }
  0x39   : > { %v493_v45 = vsel %vm492_vm12, %v490_v43, 1.0  ;;  %v494_v46 = vsel %vm492_vm12, %v491_v44, 1.0 }
  0x3a   : > { %v496_v47 = vsel %vm495_vm13, %v493_v45, 0.0  ;;  %v497_v48 = vsel %vm495_vm13, %v494_v46, 0.0  ;;  %737 = vperm.xlu2 %1040, %v734_v31  }
  0x3b   : > { %v498_v49 = vpack.c.bf16 %v496_v47, %v496_v47  ;;  %v499_v50 = vpack.c.bf16 %v497_v48, %v497_v48 }
  0x3d   : > { %v522_v51 = vsel %vm492_vm12, %v498_v49, 0  ;;  %v525_v52 = vsel %vm492_vm12, %v499_v50, 0 }
  0x3e   : > { %534 = vmatpush.bf16.msra.mxu0 %v522_v51  ;;  %553 = vmatpush.bf16.msra.mxu1 %v525_v52 }
  0x41   : > { %954 = vmatmul.msk.bf16.vlgmr.msra.gmra.mxu0 %vm514_vm14, %v977_v53  ;;  %956 = vmatmul.msk.bf16.vlgmr.msra.gmra.mxu1 %vm514_vm14, %v977_v53 }
  0x51   : > { %955 = vmatmul.msk.bf16.gmra.mxu0 %vm514_vm14, %v978_v54  ;;  %957 = vmatmul.msk.bf16.gmra.mxu1 %vm514_vm14, %v978_v54 }
  0x84   : > { %v691_v40 = vpop.permute.xlu2 %690 }
  0x8d   : > { %v596_v35 = vpop.permute.xlu0 %595  ;;  %v606_v38 = vpop.permute.xlu1 %605 }
  0x95   : > { %v601_v39 = vpop.permute.xlu0 %600 }
  0xbe   : > { %v536_v55 = vpop.f32.mrf.mxu0  ;;  %v555_v56 = vpop.f32.mrf.mxu1 }
  0xbf   : > { %v565_v13 = vmul.f32 0.2, %v536_v55  ;;  %v566_v14 = vmul.f32 0.2, %v555_v56 }
  0xc1   : > { %v573_v26 = vmax.f32 %v536_v55, %v565_v13  ;;  %v574_v27 = vmax.f32 %v555_v56, %v566_v14  ;;  %v611_v55 = vpop.permute.xlu1 %610 }
  0xc6   : > { %v538_v60 = vpop.f32.mrf.mxu0  ;;  %v557_v61 = vpop.f32.mrf.mxu1 }
  0xc7   : > { %v567_v7 = vmul.f32 0.2, %v538_v60  ;;  %v568_v10 = vmul.f32 0.2, %v557_v61 }
  0xc9   : > { %v575_v19 = vmax.f32 %v538_v60, %v567_v7  ;;  %v576_v20 = vmax.f32 %v557_v61, %v568_v10  ;;  %v696_v60 = vpop.permute.xlu2 %695 }
  0xcb   : > { %v585_v28 = vpack.c.bf16 %v575_v19, %v573_v26  ;;  %v586_v29 = vpack.c.bf16 %v576_v20, %v574_v27 }
  0xce   : > { %v541_v62 = vpop.f32.mrf.mxu0  ;;  %v560_v63 = vpop.f32.mrf.mxu1 }
  0xcf   : > { %v569_v4 = vmul.f32 0.2, %v541_v62  ;;  %v570_v5 = vmul.f32 0.2, %v560_v63 }
  0xd1   : > { %v577_v15 = vmax.f32 %v541_v62, %v569_v4  ;;  %v578_v16 = vmax.f32 %v560_v63, %v570_v5 }
  0xd6   : > { %v543_v8 = vpop.f32.mrf.mxu0  ;;  %v562_v9 = vpop.f32.mrf.mxu1 }
  0xd7   : > { %v571_v11 = vmul.f32 0.2, %v543_v8  ;;  %v572_v12 = vmul.f32 0.2, %v562_v9 }
  0xd9   : > { %v579_v17 = vmax.f32 %v543_v8, %v571_v11  ;;  %v580_v18 = vmax.f32 %v562_v9, %v572_v12  ;;  %v701_v9 = vpop.permute.xlu0 %700 }
  0xdb   : > { %v587_v21 = vpack.c.bf16 %v579_v17, %v577_v15  ;;  %v588_v22 = vpack.c.bf16 %v580_v18, %v578_v16  ;;  %v706_v18 = vpop.permute.xlu1 %705 }
  0xdd   : > { %636 = vmatpush.bf16.msra.mxu2 %v587_v21  ;;  %655 = vmatpush.bf16.msra.mxu3 %v588_v22 }
  0xe1   : > { %637 = vmatpush.bf16.msra.mxu2 %v585_v28  ;;  %656 = vmatpush.bf16.msra.mxu3 %v586_v29 }
  0xe4   : > { %966 = vmatmul.msk.bf16.vlgmr.msra.gmra.mxu2 %vm623_vm15, %v979_v30  ;;  %968 = vmatmul.msk.bf16.vlgmr.msra.gmra.mxu3 %vm623_vm15, %v979_v30 }
  0xf4   : > { %967 = vmatmul.msk.bf16.gmra.mxu2 %vm623_vm15, %v980_v32  ;;  %969 = vmatmul.msk.bf16.gmra.mxu3 %vm623_vm15, %v980_v32 }
 0x167   : > { %v639_v33 = vpop.f32.mrf.mxu2  ;;  %v658_v34 = vpop.f32.mrf.mxu3 }
 0x168   : > { %v640_v43 = vadd.f32 %v639_v33, %v596_v35  ;;  %v659_v44 = vadd.f32 %v658_v34, %v596_v35  ;;  %v738_v33 = vpop.permute.xlu2 %737 }
 0x16a   : > { %v668_v51 = vmul.f32 0.2, %v640_v43  ;;  %v669_v52 = vmul.f32 0.2, %v659_v44 }
 0x16c   : > { %v676_v58 = vmax.f32 %v640_v43, %v668_v51  ;;  %v677_v59 = vmax.f32 %v659_v44, %v669_v52 }
 0x16e   : > { %v708_v7 = vmul.f32 %v691_v40, %v676_v58  ;;  %v709_v8 = vmul.f32 %v691_v40, %v677_v59 }
 0x16f   : > { %v641_v36 = vpop.f32.mrf.mxu2  ;;  %v660_v37 = vpop.f32.mrf.mxu3 }
 0x170   : > { %v642_v41 = vadd.f32 %v641_v36, %v601_v39  ;;  %v661_v42 = vadd.f32 %v660_v37, %v601_v39  ;;  %v740_v36 = vperm.slane %v738_v33, 0 }
 0x172   : > { %v670_v47 = vmul.f32 0.2, %v642_v41  ;;  %v671_v48 = vmul.f32 0.2, %v661_v42 }
 0x174   : > { %v678_v56 = vmax.f32 %v642_v41, %v670_v47  ;;  %v679_v57 = vmax.f32 %v661_v42, %v671_v48  ;;  %v430_v47 = vld [vmem:[%s413_s28] sm:$0x3] }
 0x176   : > { %v710_v3 = vmul.f32 %v696_v60, %v678_v56  ;;  %v711_v4 = vmul.f32 %v696_v60, %v679_v57 }
 0x177   : > { %v644_v45 = vpop.f32.mrf.mxu2  ;;  %v663_v46 = vpop.f32.mrf.mxu3 }
 0x178   : > { %v645_v49 = vadd.f32 %v644_v45, %v606_v38  ;;  %v664_v50 = vadd.f32 %v663_v46, %v606_v38  ;;  %v716_v14 = vadd.f32 %v710_v3, %v708_v7  ;;  %v725_v15 = vadd.f32 %v711_v4, %v709_v8 }
 0x17a   : > { %v672_v53 = vmul.f32 0.2, %v645_v49  ;;  %v673_v54 = vmul.f32 0.2, %v664_v50 }
 0x17c   : > { %v680_v61 = vmax.f32 %v645_v49, %v672_v53  ;;  %v681_v62 = vmax.f32 %v664_v50, %v673_v54  ;;  %v743_v49 = vadd.f32 1.0, %v430_v47 }
 0x17e   : > { %v712_v10 = vmul.f32 %v701_v9, %v680_v61  ;;  %v713_v11 = vmul.f32 %v701_v9, %v681_v62  ;;  %v744_v54 = vmul.f32 0.5, %v743_v49 }
 0x17f   : > { %v646_v63 = vpop.f32.mrf.mxu2  ;;  %v665_v0 = vpop.f32.mrf.mxu3 }
 0x180   : > { %v647_v5 = vadd.f32 %v646_v63, %v611_v55  ;;  %v666_v6 = vadd.f32 %v665_v0, %v611_v55  ;;  %v717_v19 = vadd.f32 %v716_v14, %v712_v10  ;;  %v726_v20 = vadd.f32 %v725_v15, %v713_v11 }
 0x182   : > { %v674_v12 = vmul.f32 0.2, %v647_v5  ;;  %v675_v13 = vmul.f32 0.2, %v666_v6 }
 0x184   : > { %v682_v16 = vmax.f32 %v647_v5, %v674_v12  ;;  %v683_v17 = vmax.f32 %v666_v6, %v675_v13 }
 0x186   : > { %v714_v21 = vmul.f32 %v706_v18, %v682_v16  ;;  %v715_v22 = vmul.f32 %v706_v18, %v683_v17 }
 0x188   : > { %v718_v23 = vadd.f32 %v717_v19, %v714_v21  ;;  %v727_v24 = vadd.f32 %v726_v20, %v715_v22 }
 0x18a   : > { %v719_v25 = vrot.slane %v718_v23, 4  ;;  %v728_v26 = vrot.slane %v727_v24, 4 }
 0x18c   : > { %v720_v27 = vadd.f32 %v719_v25, %v718_v23  ;;  %v729_v28 = vadd.f32 %v728_v26, %v727_v24 }
 0x18e   : > { %v721_v29 = vrot.slane %v720_v27, 2  ;;  %v730_v30 = vrot.slane %v729_v28, 2 }
 0x190   : > { %v722_v31 = vadd.f32 %v721_v29, %v720_v27  ;;  %v731_v32 = vadd.f32 %v730_v30, %v729_v28 }
 0x192   : > { %v723_v34 = vrot.slane %v722_v31, 1  ;;  %v732_v35 = vrot.slane %v731_v32, 1 }
 0x194   : > { %v724_v37 = vadd.f32 %v723_v34, %v722_v31  ;;  %v733_v38 = vadd.f32 %v732_v35, %v731_v32 }
 0x196   : > { %v741_v39 = vadd.f32 %v740_v36, %v724_v37  ;;  %v742_v40 = vadd.f32 %v740_v36, %v733_v38 }
 0x198   : > { %v747_v41 = vand.u32 2147483647, %v741_v39  ;;  %v748_v42 = vand.u32 2147483647, %v742_v40  ;;  %v765_v52 = vrot.slane %v742_v40, 7  ;;  %v745_v59 = vmax.f32 %v741_v39, 0.0 }
 0x199   : > { %v746_v61 = vmax.f32 %v742_v40, 0.0 }
 0x19a   : > { %v749_v43 = vsub.f32 0.0, %v747_v41  ;;  %v750_v44 = vsub.f32 0.0, %v748_v42  ;;  %v766_v55 = vsel %vm483_vm9, %v741_v39, %v765_v52 }
 0x19b   : > { %v768_v56 = vmul.f32 %v766_v55, %v744_v54 }
 0x19c   : > { %v751_v45 = vmul.f32 1.442695, %v749_v43  ;;  %v753_v46 = vmul.f32 1.442695, %v750_v44 }
 0x19d   : > { %v770_v0 = vperm.slane %v768_v56, 0  ;;  %v771_v4 = vperm.slane %v768_v56, 1 }
 0x19e   : > { %1045 = vpow2.f32 %v751_v45 }
 0x19f   : > { %1047 = vpow2.f32 %v753_v46 }
 0x1a4   : > { %v1046_v48 = vpop.eup %1045 }
 0x1a5   : > { %v1048_v50 = vpop.eup %1047  ;;  %v755_v51 = vadd.f32 1.0, %v1046_v48 }
 0x1a6   : > { %v756_v53 = vadd.f32 1.0, %v1048_v50 }
 0x1a7   : > { %1049 = vlog2.f32 %v755_v51 }
 0x1a8   : > { %1051 = vlog2.f32 %v756_v53 }
 0x1ad   : > { %v1050_v57 = vpop.eup %1049 }
 0x1ae   : > { %v1052_v58 = vpop.eup %1051  ;;  %v758_v60 = vmul.f32 0.6931472, %v1050_v57 }
 0x1af   : > { %v760_v62 = vmul.f32 0.6931472, %v1052_v58  ;;  %782 = sbr.rel (%p971_p13) target bundleno = 443 (0x1bb), region = 60 }
 0x1b0   : > { %v761_v63 = vadd.f32 %v758_v60, %v745_v59 }
 0x1b1   : > { %v762_v3 = vadd.f32 %v760_v62, %v746_v61 }
 0x1b2   : > { %v774_v5 = vsub.f32 %v761_v63, %v770_v0 }
 0x1b3   : > { %v775_v6 = vsub.f32 %v762_v3, %v771_v4 }
 0x1b4   : > { %v783_v7 = vld [vmem:[#allocation2] sm:$0x3] }
 0x1b5   : > { %v786_v8 = vrot.slane %v775_v6, 7 }
 0x1b7   : > { %v787_v9 = vsel %vm483_vm9, %v774_v5, %v786_v8 }
 0x1b8   : > { %v789_v10 = vadd.f32 %v787_v9, %v783_v7 }
 0x1ba   : > { %794 = vst.msk [vmem:[#allocation2] sm:$0x3] %vm1245_vm0, %v789_v10 }
 0x1bb PF: > { %p972_p0 = scmp.le.s32.totalorder %s1309_s25, 512 }
 0x1bd   : > { %798 = sbr.rel (%p972_p0) target bundleno = 464 (0x1d0), region = 64 }
 0x1c2   : > { %v800_v11 = vand.u32 127, %v423_v1  ;;  %v803_v12 = vstv %s970_s24  ;;  %v802_v18 = vld [vmem:[#allocation2] sm:$0x3] }
 0x1c4   : > { %v801_v13 = vadd.s32 128, %v800_v11  ;;  %v804_v14 = vadd.s32 %v803_v12, %v800_v11 }
 0x1c6   : > { %v805_v15 = vadd.s32 %v803_v12, %v801_v13  ;;  %vm806_vm1 = vcmp.lt.s32.totalorder %v804_v14, 512 }
 0x1c7   : > { %v808_v16 = vsel %vm806_vm1, %v774_v5, 0.0 }
 0x1c8   : > { %vm807_vm2 = vcmp.lt.s32.totalorder %v805_v15, 512 }
 0x1c9   : > { %v809_v17 = vsel %vm807_vm2, %v775_v6, 0.0 }
 0x1ca   : > { %v812_v19 = vrot.slane %v809_v17, 7 }
 0x1cc   : > { %v813_v20 = vsel %vm483_vm9, %v808_v16, %v812_v19 }
 0x1cd   : > { %v815_v21 = vadd.f32 %v813_v20, %v802_v18 }
 0x1cf   : > { %820 = vst.msk [vmem:[#allocation2] sm:$0x3] %vm1245_vm0, %v815_v21 }
 0x1d0 PF: > { %s974_s7 = sshll.u32 %s1123_s10, 3  ;;  %s852_s22 = sshll.u32 %s384_s23, 4  ;;  %s853_s22 = int_to_ptr.vmem [resolvable:$true] %s852_s22 }
 0x1d1   : > { %s850_s17 = scalar_lea.hbm %s1380_s8, %s974_s7  ;;  %s840_s25 = scalar_lea.sflag [#allocation5], %s382_s20 }
 0x1d2   : > { %s854_s24 = sshll.u32 %s850_s17, 4  ;;  %s1073_s7 = scalar_lea.hbm %s1380_s8, 16  ;;  %s855_s24 = int_to_ptr.hbm [resolvable:$true] %s854_s24 }
 0x1d3   : > { %s1067_s26 = sshra.s32 %s855_s24, 4  ;;  %s1068_s26 = int_to_ptr.hbm [resolvable:$true] %s1067_s26 }
 0x1d4   : > { %s1069_s27 = scalar_lea.hbm %s1068_s26, 8  ;;  %p1074_p5 = scmp.lt.s32.totalorder %s1068_s26, %s1380_s8 }
 0x1d5   : > { %p1070_p1 = scmp.ne.s32.totalorder %s1068_s26, %s1069_s27  ;;  %p1075_p6 = scmp.lt.s32.totalorder %s1073_s7, %s1069_s27 }
 0x1d6   : > { %v824_v22 = vld [vmem:[#allocation2] sm:$0x3] }
 0x1d7   : > { %v826_v1 = vperm.slane %v824_v22, 0  ;;  %v827_v23 = vperm.slane %v824_v22, 1  ;;  %p1071_p2 = pnand %p1070_p1, %p1223_p4  ;;  %p1076_p7 = por %p1075_p6, %p1074_p5 }
 0x1d9   : > { %v830_v24 = vsel %vm483_vm9, %v826_v1, 0.0  ;;  %v831_v25 = vsel %vm483_vm9, %v827_v23, 0.0  ;;  %p1072_p3 = pneg %p1071_p2 }
 0x1da   : > { %v832_v26 = vadd.f32 %v831_v25, %v830_v24 }
 0x1db   : > { %p1077_p9 = pnand %p1076_p7, %p1072_p3 }
 0x1dc   : > { %833 = vadd.xlane.f32.xlu0 %v832_v26 }
 0x24f   : > { %v834_v2 = vpop.xlane.xlu0 %833 }
 0x250   : > { %v835_v27 = vmul.f32 0.001953125, %v834_v2 }
 0x252   : > { %v836_v28 = vperm.slane %v835_v27, 0 }
 0x254   : > { %838 = vst [vmem:[%s384_s23] sm:$0xff] %v836_v28 }
 0x255   : > { %1080 = shalt.err (!%p1077_p9)
}
 0x256   : > { %981 = dma.vmem_to_hbm [thread:$0]  (%p1223_p4), %s853_s22, 128, %s855_s24, %s840_s25  }
 0x257 PF: > { %p987_p10 = scmp.ge.s32.totalorder %s1131_s12, 2  ;;  %s866_s20 = sand.u32 1, %s1111_s29  }
 0x258   : > { %s867_s21 = scalar_lea.sflag [#allocation5], %s866_s20 }
 0x259   : > { %p984_p11 = pnand %p987_p10, %p1230_p8 }
 0x25b   : > { %p985_p12 = pneg %p984_p11 }
 0x25d   : > { %1106 = dma.done.wait (%p985_p12), %s867_s21, 128  }
 0x25e   : > { %1108 = vsyncadd (%p985_p12), %s867_s21, 4294967168  ;;  %s23_s12 = sadd.s32 1, %s1131_s12   ;;  %s1387_s29 = smov %s1115_s30 }
 0x25f   : > { %p20_p13 = scmp.ge.s32.totalorder %s23_s12, 4   ;;  %s1388_s30 = smov %s1119_s9 }
 0x260   : > { %s1389_s9 = smov %s1236_s19  ;;  %s1390_s10 = smov %s1127_s11 }
 0x261   : > { %s1391_s11 = smov %s1393_s14  ;;  %22 = sbr.rel (!%p20_p13) target bundleno = 7 (0x7), region = 109 }
 0x266   :  { %873 = vsyncpa [#allocation5], 1 }
 0x267   :  { %875 = vsyncpa [#allocation5 + $0x1], 1 }

</bundles_post_ra>
